<compile_context>
chip_gen: v6e
topology: v6e:2x2x1
jax: 0.10.0
libtpu: 0.0.40
codegen_flags: <defaults>
</compile_context>

<pallas_src>
import math

import jax
import jax.numpy as jnp
from jax.experimental import pallas as pl
from jax.experimental.pallas import tpu as pltpu


def _deepconv1d_kernel(x_ref, w1_ref, b1_ref, w2_ref, b2_ref, o_ref):
    # x: (tm, K); w1: (K, N); b1: (1, N); w2: (N, N); b2: (1, N); o: (tm, N)
    x = x_ref[...]
    h = jnp.dot(x, w1_ref[...], preferred_element_type=jnp.float32) + b1_ref[...]
    r = jnp.maximum(h, 0.0)                                     # relu
    y = jnp.dot(r, w2_ref[...], preferred_element_type=jnp.float32) + b2_ref[...]
    o_ref[...] = (y + h).astype(o_ref.dtype)                    # residual: + pre-relu h


def _round_up(v, m):
    return -(-v // m) * m


def _cdiv(a, b):
    return -(-a // b)


def _tpu_vmem_capacity():
    """Per-TensorCore VMEM capacity; conservative 64 MiB if query fails."""
    try:
        info = pltpu.get_tpu_info()
        cap = int(getattr(info, "vmem_capacity_bytes", 0))
        if cap > 0:
            return cap
    except Exception:
        pass
    return 64 << 20


def _pack_params(w1, b1, w2, b2):
    """Pack weights/biases into lane-dense (128-aligned) form. Done once."""
    nx, nf = int(w1.shape[0]), int(w1.shape[1])
    lane = 128
    p_nx = lane // math.gcd(lane, nx)
    p_nf = lane // math.gcd(lane, nf)
    pack = (p_nx * p_nf) // math.gcd(p_nx, p_nf)        # lcm -> lane-aligned widths

    if pack * max(nx, nf) <= 2048:
        # Block-diagonal packing: exact, keeps weights tiny (<= 2048 wide).
        K, N = pack * nx, pack * nf
        eye = jnp.eye(pack, dtype=w1.dtype)
        w1_blk = jnp.kron(eye, w1)                       # (K, N)
        w2_blk = jnp.kron(eye, w2)                       # (N, N)
        b1_blk = jnp.tile(jnp.reshape(b1, (1, nf)), (1, pack))
        b2_blk = jnp.tile(jnp.reshape(b2, (1, nf)), (1, pack))
        nx_p, nf_p = nx, nf
    else:
        # Lane-pad fallback for wide features: zero-pad nx/nf up to multiples
        # of 128 so stores stay lane-dense (padded output columns are exactly
        # zero and sliced off afterwards).
        pack = 1
        nx_p, nf_p = _round_up(nx, lane), _round_up(nf, lane)
        K, N = nx_p, nf_p
        w1_blk = jnp.pad(w1, ((0, nx_p - nx), (0, nf_p - nf)))
        w2_blk = jnp.pad(w2, ((0, nf_p - nf), (0, nf_p - nf)))
        b1_blk = jnp.pad(jnp.reshape(b1, (1, nf)), ((0, 0), (0, nf_p - nf)))
        b2_blk = jnp.pad(jnp.reshape(b2, (1, nf)), ((0, 0), (0, nf_p - nf)))

    return dict(nx=nx, nf=nf, nx_p=nx_p, nf_p=nf_p, pack=pack, K=K, N=N,
                w1=w1_blk, b1=b1_blk, w2=w2_blk, b2=b2_blk)


def _deepconv1d_packed(x, p, tm):
    nx, nf, pack, K, N = p["nx"], p["nf"], p["pack"], p["K"], p["N"]
    size_out = x.shape[:-1] + (nf,)
    x2 = x.reshape(-1, nx)
    M = x2.shape[0]
    itemsize = 4

    # Feature padding only needed on the (untested-here) lane-pad fallback.
    if p["nx_p"] != nx:
        x2 = jnp.pad(x2, ((0, 0), (0, p["nx_p"] - nx)))

    # Pad rows only to a multiple of `pack` (<= pack-1 rows); ragged last grid
    # block is handled by Pallas (OOB stores dropped), so no tile-align pad.
    Mp = _round_up(M, pack)
    if Mp != M:
        x2 = jnp.pad(x2, ((0, Mp - M), (0, 0)))
    rows = Mp // pack
    x_packed = x2.reshape(rows, K)

    # ---- generation-aware tile selection ----
    vmem_cap = _tpu_vmem_capacity()
    budget = int(vmem_cap * 0.70)                 # working budget for this call
    is_small_vmem = vmem_cap <= (64 << 20)        # v7x (or unknown) vs v5e/v6e
    tile_floor = 2048 if is_small_vmem else 1024  # packed rows per grid step
    if tm is None:
        tm = 4096 if is_small_vmem else 8192      # bigger tiles on 128 MiB chips

    # Per-packed-row VMEM: double-buffered x/out tiles + f32 temporaries.
    per_row = (2 * (K + N) + 4 * N) * itemsize
    weights_bytes = 2 * (K * N + N * N + 2 * N) * itemsize  # resident (dbl-buffered)
    max_tm = max(8, ((budget - weights_bytes) // per_row) // 8 * 8)

    # Never drop below the traffic floor (unless VMEM/rows force it); prefer
    # a handful of big balanced steps over many tiny ones.
    tm_cap = max(min(tile_floor, max_tm), min(tm, max_tm))
    if rows <= tm_cap:
        tm_eff = rows                              # single full-extent block
        grid0 = 1
    else:
        nsteps = _cdiv(rows, tm_cap)
        tm_eff = _round_up(_cdiv(rows, nsteps), 8) # balanced, (8,*)-aligned tiles
        grid0 = _cdiv(rows, tm_eff)                # ragged last block allowed

    vmem_needed = (2 * tm_eff * (K + N) + 4 * tm_eff * N) * itemsize + weights_bytes
    vmem_limit = int(min(max(2 * vmem_needed, 32 << 20), int(vmem_cap * 0.75)))

    cost = pl.CostEstimate(
        flops=int(2 * M * nx * nf + 2 * M * nf * nf),
        transcendentals=0,
        bytes_accessed=int(itemsize * (M * (nx + nf) + nx * nf + nf * nf + 2 * nf)),
    )

    out_packed = pl.pallas_call(
        _deepconv1d_kernel,
        out_shape=jax.ShapeDtypeStruct((rows, N), x.dtype),
        grid_spec=pltpu.PrefetchScalarGridSpec(
            num_scalar_prefetch=0,
            grid=(grid0,),
            in_specs=[
                pl.BlockSpec((tm_eff, K), lambda i: (i, 0)),   # x row tile (lane-dense)
                # Weights/biases: constant index_map -> fetched once, VMEM-resident.
                pl.BlockSpec((K, N), lambda i: (0, 0)),        # w1 (block-diag / padded)
                pl.BlockSpec((1, N), lambda i: (0, 0)),        # b1
                pl.BlockSpec((N, N), lambda i: (0, 0)),        # w2
                pl.BlockSpec((1, N), lambda i: (0, 0)),        # b2
            ],
            out_specs=pl.BlockSpec((tm_eff, N), lambda i: (i, 0)),  # lane-dense stores
        ),
        compiler_params=pltpu.CompilerParams(
            dimension_semantics=("parallel",),
            vmem_limit_bytes=vmem_limit,
        ),
        cost_estimate=cost,
    )(x_packed, p["w1"], p["b1"], p["w2"], p["b2"])

    out = out_packed.reshape(Mp, p["nf_p"])
    if p["nf_p"] != nf:
        out = out[:, :nf]
    if Mp != M:
        out = out[:M]
    return out.reshape(size_out)


def make_deepconv1d(w1, b1, w2, b2, *, tm=None):
    """Pack parameters once; returns a jitted apply(x) == DeepConv1D.forward."""
    p = _pack_params(w1, b1, w2, b2)

    def apply(x):
        return _deepconv1d_packed(x, p, tm)

    return jax.jit(apply)


def deepconv1d(x, w1, b1, w2, b2, *, tm=None):
    """One-shot convenience wrapper (re-packs weights on every call)."""
    return _deepconv1d_packed(x, _pack_params(w1, b1, w2, b2), tm)


def deepconv1d_ref(x, w1, b1, w2, b2):
    nf = w1.shape[1]
    size_out = x.shape[:-1] + (nf,)
    x2 = x.reshape(-1, x.shape[-1])
    h = x2 @ w1 + jnp.reshape(b1, (1, nf))
    y = jnp.maximum(h, 0.0) @ w2 + jnp.reshape(b2, (1, nf))
    return (y + h).reshape(size_out)


if __name__ == "__main__":
    # Module hyperparams: rf=1, nx=32 input features, nf=32 output features.
    nx, nf = 32, 32
    batch, seq = 2, 8                      # x.view(-1, nx) -> 16 flattened rows

    key = jax.random.PRNGKey(0)
    kx, kw1, kw2 = jax.random.split(key, 3)

    # torch init: normal(std=0.02) weights, zero biases.
    w1 = (0.02 * jax.random.normal(kw1, (nx, nf))).astype(jnp.float32)
    b1 = jnp.zeros((nf,), jnp.float32)
    w2 = (0.02 * jax.random.normal(kw2, (nf, nf))).astype(jnp.float32)
    b2 = jnp.zeros((nf,), jnp.float32)

    x = jax.random.normal(kx, (batch, seq, nx), dtype=jnp.float32)

    fwd = make_deepconv1d(w1, b1, w2, b2)  # packs weights once, jitted apply
    out = jax.block_until_ready(fwd(x))

    ref = deepconv1d_ref(x, w1, b1, w2, b2)
    assert out.shape == (batch, seq, nf)
    assert jnp.allclose(out, ref, atol=1e-5, rtol=1e-5)

    print("KERNEL_OK")
</pallas_src>

<mosaic_0001>
module attributes {stable_mosaic.version = 11 : i64} {
  func.func @_deepconv1d_kernel(%arg0: i32, %arg1: memref<4x128xf32, #tpu.memory_space<vmem>>, %arg2: memref<128x128xf32, #tpu.memory_space<vmem>>, %arg3: memref<1x128xf32, #tpu.memory_space<vmem>>, %arg4: memref<128x128xf32, #tpu.memory_space<vmem>>, %arg5: memref<1x128xf32, #tpu.memory_space<vmem>>, %arg6: memref<4x128xf32, #tpu.memory_space<vmem>>) attributes {dimension_semantics = [#tpu.dimension_semantics<parallel>], iteration_bounds = array<i64: 1>, scalar_prefetch = 0 : i64, scratch_operands = 0 : i64, tpu.core_type = #tpu.core_type<tc>, window_params = [{transform_indices = @transform_0, window_bounds = array<i64: 4, 128>}, {pipeline_mode = #tpu.pipeline_mode<synchronous>, transform_indices = @transform_1, window_bounds = array<i64: 128, 128>}, {pipeline_mode = #tpu.pipeline_mode<synchronous>, transform_indices = @transform_2, window_bounds = array<i64: 1, 128>}, {pipeline_mode = #tpu.pipeline_mode<synchronous>, transform_indices = @transform_3, window_bounds = array<i64: 128, 128>}, {pipeline_mode = #tpu.pipeline_mode<synchronous>, transform_indices = @transform_4, window_bounds = array<i64: 1, 128>}, {transform_indices = @transform_5, window_bounds = array<i64: 4, 128>}]} {
    %c0 = arith.constant 0 : index
    %c0_0 = arith.constant 0 : index
    %0 = vector.load %arg1[%c0, %c0_0] : memref<4x128xf32, #tpu.memory_space<vmem>>, vector<4x128xf32>
    %c0_1 = arith.constant 0 : index
    %c0_2 = arith.constant 0 : index
    %1 = vector.load %arg2[%c0_1, %c0_2] : memref<128x128xf32, #tpu.memory_space<vmem>>, vector<128x128xf32>
    %cst = arith.constant dense<0.000000e+00> : vector<4x128xf32>
    %2 = tpu.matmul %0, %1, %cst {dimension_numbers = #tpu.dot_dimension_numbers<[1], [0], [0], [1], [0, 0, 1, 1], [], []>} : vector<4x128xf32>, vector<128x128xf32>, vector<4x128xf32> -> vector<4x128xf32>
    %c0_3 = arith.constant 0 : index
    %c0_4 = arith.constant 0 : index
    %3 = vector.load %arg3[%c0_3, %c0_4] : memref<1x128xf32, #tpu.memory_space<vmem>>, vector<1x128xf32>
    %4 = vector.broadcast %3 : vector<1x128xf32> to vector<4x128xf32>
    %5 = arith.addf %2, %4 : vector<4x128xf32>
    %cst_5 = arith.constant 0.000000e+00 : f32
    %6 = vector.broadcast %cst_5 : f32 to vector<4x128xf32>
    %7 = arith.maximumf %5, %6 : vector<4x128xf32>
    %c0_6 = arith.constant 0 : index
    %c0_7 = arith.constant 0 : index
    %8 = vector.load %arg4[%c0_6, %c0_7] : memref<128x128xf32, #tpu.memory_space<vmem>>, vector<128x128xf32>
    %cst_8 = arith.constant dense<0.000000e+00> : vector<4x128xf32>
    %9 = tpu.matmul %7, %8, %cst_8 {dimension_numbers = #tpu.dot_dimension_numbers<[1], [0], [0], [1], [0, 0, 1, 1], [], []>} : vector<4x128xf32>, vector<128x128xf32>, vector<4x128xf32> -> vector<4x128xf32>
    %c0_9 = arith.constant 0 : index
    %c0_10 = arith.constant 0 : index
    %10 = vector.load %arg5[%c0_9, %c0_10] : memref<1x128xf32, #tpu.memory_space<vmem>>, vector<1x128xf32>
    %11 = vector.broadcast %10 : vector<1x128xf32> to vector<4x128xf32>
    %12 = arith.addf %9, %11 : vector<4x128xf32>
    %13 = arith.addf %12, %5 : vector<4x128xf32>
    %c0_11 = arith.constant 0 : index
    %c0_12 = arith.constant 0 : index
    %14 = vector.load %arg6[%c0_11, %c0_12] : memref<4x128xf32, #tpu.memory_space<vmem>>, vector<4x128xf32>
    tpu.vector_store %arg6[%c0_11, %c0_12], %13 {strides = array<i32>} : memref<4x128xf32, #tpu.memory_space<vmem>>, vector<4x128xf32>,
    return
  }
  func.func @transform_0(%arg0: i32) -> (i32, i32) {
    %c0_i32 = arith.constant 0 : i32
    %c0_i32_0 = arith.constant 0 : i32
    return %arg0, %c0_i32 : i32, i32
  }
  func.func @transform_1(%arg0: i32) -> (i32, i32) {
    %c0_i32 = arith.constant 0 : i32
    %c0_i32_0 = arith.constant 0 : i32
    %c0_i32_1 = arith.constant 0 : i32
    return %c0_i32, %c0_i32_0 : i32, i32
  }
  func.func @transform_2(%arg0: i32) -> (i32, i32) {
    %c0_i32 = arith.constant 0 : i32
    %c0_i32_0 = arith.constant 0 : i32
    %c0_i32_1 = arith.constant 0 : i32
    return %c0_i32, %c0_i32_0 : i32, i32
  }
  func.func @transform_3(%arg0: i32) -> (i32, i32) {
    %c0_i32 = arith.constant 0 : i32
    %c0_i32_0 = arith.constant 0 : i32
    %c0_i32_1 = arith.constant 0 : i32
    return %c0_i32, %c0_i32_0 : i32, i32
  }
  func.func @transform_4(%arg0: i32) -> (i32, i32) {
    %c0_i32 = arith.constant 0 : i32
    %c0_i32_0 = arith.constant 0 : i32
    %c0_i32_1 = arith.constant 0 : i32
    return %c0_i32, %c0_i32_0 : i32, i32
  }
  func.func @transform_5(%arg0: i32) -> (i32, i32) {
    %c0_i32 = arith.constant 0 : i32
    %c0_i32_0 = arith.constant 0 : i32
    return %arg0, %c0_i32 : i32, i32
  }
}

</mosaic_0001>

<bundles_post_ra>
// kernel: apply.1
= control target key start
LH: loop header
LB: loop body
LE: loop exit
PB: predicated region body
PF: predicated region fallthrough
CT: control target
= control target key end

     0   :  { %10 = vsyncpa [#allocation3], 0  ;;  %s488_s0 = inlined_call_operand.vmem [shape: f32[4,128], index: 0, kind: input, shape index: {}]   ;;  %s489_s1 = inlined_call_operand.hbm [shape: f32[128,128], index: 1, kind: input, shape index: {}]   ;;  %s490_s2 = inlined_call_operand.vmem [shape: f32[1,128], index: 2, kind: input, shape index: {}, may-alias: {2,4}]   ;;  %s491_s3 = inlined_call_operand.hbm [shape: f32[128,128], index: 3, kind: input, shape index: {}]   ;;  %s492_s4 = inlined_call_operand.vmem [shape: f32[1,128], index: 4, kind: input, shape index: {}, may-alias: {2,4}]   ;;  %s493_s5 = inlined_call_operand.vmem [shape: f32[4,128], index: 5, kind: output, shape index: {}]  }
   0x1   :  { %11 = vsyncpa [#allocation5], 0  ;;  %s400_s18 = smov [#allocation2]  }
   0x2   :  { %s19_s19 = sshll.u32 %s400_s18, 4  ;;  %s20_s19 = int_to_ptr.vmem [resolvable:$true] %s19_s19 }
   0x3   :  { %s364_s20 = scalar_lea.vmem %s20_s19, 2048  ;;  %p369_p1 = scmp.lt.s32.totalorder %s20_s19, %s20_s19 }
   0x4   :  { %p365_p0 = scmp.ne.s32.totalorder %s20_s19, %s364_s20  ;;  %p370_p2 = scmp.lt.s32.totalorder %s364_s20, %s364_s20 }
   0x6   :  { %p371_p3 = por %p370_p2, %p369_p1 }
   0x8   :  { %p372_p4 = pnand %p371_p3, %p365_p0 }
   0xa   :  { %375 = shalt.err (!%p372_p4)
}
   0xb   :  { %s401_s21 = smov 128   ;;  %s402_s22 = smov 8  }
   0xc   :  { %25 = dma.hbm_to_vmem [thread:$0]  %s489_s1, 2048, %s20_s19, [#allocation3], %s401_s21, %s401_s21, %s402_s22  }
   0xd   :  { %s403_s25 = smov [#allocation4]  }
   0xe   :  { %s33_s26 = sshll.u32 %s403_s25, 4  ;;  %s34_s26 = int_to_ptr.vmem [resolvable:$true] %s33_s26 }
   0xf   :  { %s384_s27 = scalar_lea.vmem %s34_s26, 2048  ;;  %p389_p6 = scmp.lt.s32.totalorder %s34_s26, %s34_s26 }
  0x10   :  { %p385_p5 = scmp.ne.s32.totalorder %s34_s26, %s384_s27  ;;  %p390_p7 = scmp.lt.s32.totalorder %s384_s27, %s384_s27 }
  0x12   :  { %p391_p8 = por %p390_p7, %p389_p6 }
  0x14   :  { %p392_p9 = pnand %p391_p8, %p385_p5 }
  0x16   :  { %395 = shalt.err (!%p392_p9)
}
  0x17   :  { %39 = dma.hbm_to_vmem [thread:$0]  %s491_s3, 2048, %s34_s26, [#allocation5], %s401_s21, %s401_s21, %s402_s22  }
  0x18   :  { %396 = dma.done.wait [#allocation3], 2048  }
  0x19   :  { %397 = vsyncadd [#allocation3], 4294965248 }
  0x1a   :  { %398 = dma.done.wait [#allocation5], 2048  }
  0x1b   :  { %399 = vsyncadd [#allocation5], 4294965248  ;;  %v404_v0 = vmov 0.0   ;;  %vm405_vm0 = vmmov 0   ;;  %v64_v1 = vld [vmem:[#allocation2 + $0x78] sm:$0xff]  ;;  %v63_v2 = vld [vmem:[#allocation2 + $0x70] sm:$0xff] }
  0x1c   :  { %280 = vmatprep.subr.mxu0 %v404_v0  ;;  %312 = vmatprep.mubr.msk.f32.mxu0 %vm405_vm0, %v404_v0  ;;  %v62_v3 = vld [vmem:[#allocation2 + $0x68] sm:$0xff]  ;;  %v61_v4 = vld [vmem:[#allocation2 + $0x60] sm:$0xff]  ;;  %v158_v5 = vld [vmem:[#allocation4 + $0x78] sm:$0xff] }
  0x1d   :  { %315 = vmatprep.subr.mxu1 %v404_v0  ;;  %347 = vmatprep.mubr.msk.f32.mxu1 %vm405_vm0, %v404_v0  ;;  %v60_v6 = vld [vmem:[#allocation2 + $0x58] sm:$0xff]  ;;  %v157_v7 = vld [vmem:[#allocation4 + $0x70] sm:$0xff]  ;;  %v156_v8 = vld [vmem:[#allocation4 + $0x68] sm:$0xff] }
  0x1e   :  { %281 = vmatpush3.msra.mxu0 %v64_v1  ;;  %316 = vmatpush3.msra.mxu1 %v158_v5  ;;  %v59_v9 = vld [vmem:[#allocation2 + $0x50] sm:$0xff]  ;;  %v155_v10 = vld [vmem:[#allocation4 + $0x60] sm:$0xff]  ;;  %v58_v11 = vld [vmem:[#allocation2 + $0x48] sm:$0xff] }
  0x1f   :  { %282 = vmatprep.subr.mxu0 %v404_v0  ;;  %317 = vmatprep.subr.mxu1 %v404_v0  ;;  %v154_v12 = vld [vmem:[#allocation4 + $0x58] sm:$0xff]  ;;  %v57_v13 = vld [vmem:[#allocation2 + $0x40] sm:$0xff]  ;;  %v153_v14 = vld [vmem:[#allocation4 + $0x50] sm:$0xff] }
  0x20   :  { %283 = vmatpush3.msra.mxu0 %v63_v2  ;;  %318 = vmatpush3.msra.mxu1 %v157_v7  ;;  %v56_v15 = vld [vmem:[#allocation2 + $0x38] sm:$0xff]  ;;  %v152_v16 = vld [vmem:[#allocation4 + $0x48] sm:$0xff]  ;;  %v55_v17 = vld [vmem:[#allocation2 + $0x30] sm:$0xff] }
  0x21   :  { %284 = vmatprep.subr.mxu0 %v404_v0  ;;  %319 = vmatprep.subr.mxu1 %v404_v0  ;;  %v151_v18 = vld [vmem:[#allocation4 + $0x40] sm:$0xff]  ;;  %v54_v19 = vld [vmem:[#allocation2 + $0x28] sm:$0xff]  ;;  %v150_v20 = vld [vmem:[#allocation4 + $0x38] sm:$0xff] }
  0x22   :  { %285 = vmatpush3.msra.mxu0 %v62_v3  ;;  %320 = vmatpush3.msra.mxu1 %v156_v8  ;;  %v53_v21 = vld [vmem:[#allocation2 + $0x20] sm:$0xff]  ;;  %v149_v22 = vld [vmem:[#allocation4 + $0x30] sm:$0xff]  ;;  %v52_v23 = vld [vmem:[#allocation2 + $0x18] sm:$0xff] }
  0x23   :  { %286 = vmatprep.subr.mxu0 %v404_v0  ;;  %321 = vmatprep.subr.mxu1 %v404_v0  ;;  %v148_v24 = vld [vmem:[#allocation4 + $0x28] sm:$0xff]  ;;  %v51_v25 = vld [vmem:[#allocation2 + $0x10] sm:$0xff]  ;;  %v147_v26 = vld [vmem:[#allocation4 + $0x20] sm:$0xff] }
  0x24   :  { %287 = vmatpush3.msra.mxu0 %v61_v4  ;;  %322 = vmatpush3.msra.mxu1 %v155_v10  ;;  %v50_v27 = vld [vmem:[#allocation2 + $0x8] sm:$0xff]  ;;  %v146_v28 = vld [vmem:[#allocation4 + $0x18] sm:$0xff]  ;;  %v49_v29 = vld [vmem:[#allocation2] sm:$0xff] }
  0x25   :  { %288 = vmatprep.subr.mxu0 %v404_v0  ;;  %323 = vmatprep.subr.mxu1 %v404_v0  ;;  %v48_v30 = vld [vmem:[%s488_s0] sm:$0xf]  ;;  %v145_v31 = vld [vmem:[#allocation4 + $0x10] sm:$0xff]  ;;  %v144_v32 = vld [vmem:[#allocation4 + $0x8] sm:$0xff] }
  0x26   :  { %289 = vmatpush3.msra.mxu0 %v60_v6  ;;  %324 = vmatpush3.msra.mxu1 %v154_v12  ;;  %v143_v33 = vld [vmem:[#allocation4] sm:$0xff] }
  0x27   :  { %290 = vmatprep.subr.mxu0 %v404_v0  ;;  %325 = vmatprep.subr.mxu1 %v404_v0  ;;  %v244_v34 = vld [vmem:[%s490_s2] ss:$0 sm:$0xff] }
  0x28   :  { %291 = vmatpush3.msra.mxu0 %v59_v9  ;;  %326 = vmatpush3.msra.mxu1 %v153_v14  ;;  %v245_v39 = vld [vmem:[%s492_s4] ss:$0 sm:$0xff] }
  0x29   :  { %292 = vmatprep.subr.mxu0 %v404_v0  ;;  %327 = vmatprep.subr.mxu1 %v404_v0 }
  0x2a   :  { %293 = vmatpush3.msra.mxu0 %v58_v11  ;;  %328 = vmatpush3.msra.mxu1 %v152_v16 }
  0x2b   :  { %294 = vmatprep.subr.mxu0 %v404_v0  ;;  %329 = vmatprep.subr.mxu1 %v404_v0 }
  0x2c   :  { %295 = vmatpush3.msra.mxu0 %v57_v13  ;;  %330 = vmatpush3.msra.mxu1 %v151_v18 }
  0x2d   :  { %296 = vmatprep.subr.mxu0 %v404_v0  ;;  %331 = vmatprep.subr.mxu1 %v404_v0 }
  0x2e   :  { %297 = vmatpush3.msra.mxu0 %v56_v15  ;;  %332 = vmatpush3.msra.mxu1 %v150_v20 }
  0x2f   :  { %298 = vmatprep.subr.mxu0 %v404_v0  ;;  %333 = vmatprep.subr.mxu1 %v404_v0 }
  0x30   :  { %299 = vmatpush3.msra.mxu0 %v55_v17  ;;  %334 = vmatpush3.msra.mxu1 %v149_v22 }
  0x31   :  { %300 = vmatprep.subr.mxu0 %v404_v0  ;;  %335 = vmatprep.subr.mxu1 %v404_v0 }
  0x32   :  { %301 = vmatpush3.msra.mxu0 %v54_v19  ;;  %336 = vmatpush3.msra.mxu1 %v148_v24 }
  0x33   :  { %302 = vmatprep.subr.mxu0 %v404_v0  ;;  %337 = vmatprep.subr.mxu1 %v404_v0 }
  0x34   :  { %303 = vmatpush3.msra.mxu0 %v53_v21  ;;  %338 = vmatpush3.msra.mxu1 %v147_v26 }
  0x35   :  { %304 = vmatprep.subr.mxu0 %v404_v0  ;;  %339 = vmatprep.subr.mxu1 %v404_v0 }
  0x36   :  { %305 = vmatpush3.msra.mxu0 %v52_v23  ;;  %340 = vmatpush3.msra.mxu1 %v146_v28 }
  0x37   :  { %306 = vmatprep.subr.mxu0 %v404_v0  ;;  %341 = vmatprep.subr.mxu1 %v404_v0 }
  0x38   :  { %307 = vmatpush3.msra.mxu0 %v51_v25  ;;  %342 = vmatpush3.msra.mxu1 %v145_v31 }
  0x39   :  { %308 = vmatprep.subr.mxu0 %v404_v0  ;;  %343 = vmatprep.subr.mxu1 %v404_v0 }
  0x3a   :  { %309 = vmatpush3.msra.mxu0 %v50_v27  ;;  %344 = vmatpush3.msra.mxu1 %v144_v32 }
  0x3b   :  { %310 = vmatprep.subr.mxu0 %v404_v0  ;;  %345 = vmatprep.subr.mxu1 %v404_v0 }
  0x3c   :  { %311 = vmatpush3.msra.mxu0 %v49_v29  ;;  %346 = vmatpush3.msra.mxu1 %v143_v33 }
  0x3d   :  { %313 = vmatmul.mubr.f32.vlgmr.msra.gmra.mxu0 %v48_v30 }
  0xfd   :  { %v138_v35 = vpop.f32.mrf.mxu0 }
  0xfe   :  { %v139_v36 = vadd.f32 %v244_v34, %v138_v35 }
  0xff   :  { %v314_v37 = vpop.f32.mrf.mxu0 }
 0x100   :  { %v142_v38 = vmax.f32 %v139_v36, 0.0 }
 0x102   :  { %348 = vmatmul.mubr.f32.vlgmr.msra.gmra.mxu1 %v142_v38 }
 0x1c2   :  { %v232_v40 = vpop.f32.mrf.mxu1 }
 0x1c3   :  { %v233_v41 = vadd.f32 %v245_v39, %v232_v40 }
 0x1c4   :  { %v349_v42 = vpop.f32.mrf.mxu1 }
 0x1c5   :  { %v236_v43 = vadd.f32 %v233_v41, %v139_v36 }
 0x1c7   :  { %237 = vst [vmem:[%s493_s5] sm:$0xf] %v236_v43 }
 0x1c8   :  { %242 = vsyncpa [#allocation3], 1 }
 0x1c9   :  { %243 = vsyncpa [#allocation5], 1 }

</bundles_post_ra>
